<compile_context>
chip_gen: v5e
topology: v5e:2x2
jax: 0.10.0
libtpu: 0.0.40
codegen_flags: <defaults>
</compile_context>

<pallas_src>
import functools

import jax
import jax.numpy as jnp
from jax.experimental import pallas as pl
from jax.experimental.pallas import tpu as pltpu

# Keep kernel matmuls and the pure-JAX reference on the same f32 precision path.
jax.config.update("jax_default_matmul_precision", "highest")


# ----------------------------------------------------------------------------
# Tiling helper: largest tile <= target that is `align`-aligned and divides dim
# (falls back to the full dim so block shapes always satisfy the (8,128) rule).
# ----------------------------------------------------------------------------
def _pick_tile(dim, target, align):
    if dim <= target:
        return dim
    t = (target // align) * align
    while t >= align:
        if dim % t == 0:
            return t
        t -= align
    return dim


# ----------------------------------------------------------------------------
# Linear layer kernel:  o = x @ w + b   (w already transposed to (D_in, D_out))
# Tiled over (M, N, K) with a VMEM f32 accumulator; K is the reduction axis.
# ----------------------------------------------------------------------------
def _linear_kernel(x_ref, w_ref, b_ref, o_ref, acc_ref, *, cast_dtype):
    kk = pl.program_id(2)

    @pl.when(kk == 0)
    def _():
        acc_ref[...] = jnp.zeros_like(acc_ref)

    x = x_ref[...]
    w = w_ref[...]
    if cast_dtype is not None:
        x = x.astype(cast_dtype)
        w = w.astype(cast_dtype)
    acc_ref[...] += jnp.dot(x, w, preferred_element_type=jnp.float32)

    @pl.when(kk == pl.num_programs(2) - 1)
    def _():
        o_ref[...] = (acc_ref[...] + b_ref[...]).astype(o_ref.dtype)


def pallas_linear(x, w_t, b, *, tm=256, tn=256, tk=512, cast_dtype=None):
    """x: (M, D_in), w_t: (D_in, D_out) (pre-transposed), b: (D_out,) -> (M, D_out)."""
    M, Din = x.shape
    Dout = w_t.shape[1]
    tm = _pick_tile(M, tm, 8)
    tn = _pick_tile(Dout, tn, 128)
    tk = _pick_tile(Din, tk, 128)
    grid = (M // tm, Dout // tn, Din // tk)

    kernel = functools.partial(_linear_kernel, cast_dtype=cast_dtype)
    return pl.pallas_call(
        kernel,
        out_shape=jax.ShapeDtypeStruct((M, Dout), x.dtype),
        grid_spec=pltpu.PrefetchScalarGridSpec(
            num_scalar_prefetch=0,
            grid=grid,
            in_specs=[
                pl.BlockSpec((tm, tk), lambda i, j, k: (i, k)),
                pl.BlockSpec((tk, tn), lambda i, j, k: (k, j)),
                pl.BlockSpec((1, tn), lambda i, j, k: (0, j)),
            ],
            out_specs=pl.BlockSpec((tm, tn), lambda i, j, k: (i, j)),
            scratch_shapes=[pltpu.VMEM((tm, tn), jnp.float32)],
        ),
        compiler_params=pltpu.CompilerParams(
            dimension_semantics=("parallel", "parallel", "arbitrary"),
            vmem_limit_bytes=48 * 1024 * 1024,   # safe on v5e/v6e (128M) and v7x (64M)
        ),
    )(x, w_t, b.reshape(1, Dout))


# ----------------------------------------------------------------------------
# Attention kernel.  One grid step handles ALL heads for one (batch, Sq-tile):
#   inputs  q/k/v in (B, S, d_model) projection layout (head split folded in),
#   outputs concat-attention in (B, Sq, d_model) layout (lane-dense stores)
#           plus the full attention weights (B, H, Sq, Sk) required by the API.
# ----------------------------------------------------------------------------
def _attention_kernel(q_ref, k_ref, v_ref, m_ref, o_ref, aw_ref, *,
                      num_heads, depth, mask_heads, cast_dtype):
    q = q_ref[0]          # (tq, d_model)
    k = k_ref[0]          # (Sk, d_model)
    v = v_ref[0]          # (Sk, d_model)

    scale = 1.0 / (float(depth) ** 0.5)

    neg_shared = None
    if mask_heads == 1:
        neg_shared = m_ref[0, 0] * (-1.0e9)          # (tq, Sk), shared across heads

    out_heads = []
    for h in range(num_heads):                        # static unroll over heads
        lo = h * depth
        hi = lo + depth
        qh = q[:, lo:hi]                              # (tq, depth)
        kh = k[:, lo:hi]                              # (Sk, depth)
        vh = v[:, lo:hi]                              # (Sk, depth)
        if cast_dtype is not None:
            qh = qh.astype(cast_dtype)
            kh = kh.astype(cast_dtype)
            vh = vh.astype(cast_dtype)

        # q @ k^T expressed as trans_b dot_general (no explicit in-kernel transpose)
        logits = jax.lax.dot_general(
            qh, kh, (((1,), (1,)), ((), ())),
            preferred_element_type=jnp.float32) * scale

        neg = neg_shared if neg_shared is not None else m_ref[0, h] * (-1.0e9)
        logits = logits + neg

        # numerically stable softmax (matches torch.nn.Softmax / jax.nn.softmax)
        lmax = jnp.max(logits, axis=-1, keepdims=True)
        e = jnp.exp(logits - lmax)
        attn = e / jnp.sum(e, axis=-1, keepdims=True)

        aw_ref[0, h] = attn.astype(aw_ref.dtype)

        p = attn.astype(cast_dtype) if cast_dtype is not None else attn
        out_heads.append(jnp.dot(p, vh, preferred_element_type=jnp.float32))

    # heads are contiguous column blocks of d_model -> concatenating on the lane
    # axis yields the "concat_attention" layout directly (no transpose / reshape).
    o_ref[0] = jnp.concatenate(out_heads, axis=-1).astype(o_ref.dtype)


def pallas_mha_attention(q_p, k_p, v_p, mask, num_heads, *, tq_target=256,
                         cast_dtype=None):
    """q_p/k_p/v_p: (B, S, d_model) projected activations (heads not split).
    Returns (concat_attention (B, Sq, d_model), attention_weights (B, H, Sq, Sk))."""
    B, Sq, d_model = q_p.shape
    Sk = k_p.shape[1]
    depth = d_model // num_heads

    if mask is None:
        mask = jnp.zeros((1, 1, Sq, Sk), jnp.float32)
    mask = jnp.asarray(mask, jnp.float32)
    mask = mask.reshape((1,) * (4 - mask.ndim) + mask.shape)
    Bm, Hm = mask.shape[0], mask.shape[1]
    assert Bm in (1, B) and Hm in (1, num_heads)
    # Only expand the (cheap) Sq/Sk dims; batch/head broadcast is handled by the
    # index_map re-reading the same HBM tile (no (B,H,Sq,Sk) materialization).
    mask = jnp.broadcast_to(mask, (Bm, Hm, Sq, Sk))

    tq = _pick_tile(Sq, tq_target, 8)
    grid = (B, Sq // tq)

    kernel = functools.partial(
        _attention_kernel, num_heads=num_heads, depth=depth,
        mask_heads=Hm, cast_dtype=cast_dtype)

    out, attn_w = pl.pallas_call(
        kernel,
        out_shape=(
            jax.ShapeDtypeStruct((B, Sq, d_model), q_p.dtype),
            jax.ShapeDtypeStruct((B, num_heads, Sq, Sk), jnp.float32),
        ),
        grid_spec=pltpu.PrefetchScalarGridSpec(
            num_scalar_prefetch=0,
            grid=grid,
            in_specs=[
                pl.BlockSpec((1, tq, d_model), lambda b, qi: (b, qi, 0)),
                pl.BlockSpec((1, Sk, d_model), lambda b, qi: (b, 0, 0)),
                pl.BlockSpec((1, Sk, d_model), lambda b, qi: (b, 0, 0)),
                pl.BlockSpec((1, Hm, tq, Sk),
                             lambda b, qi: (b if Bm > 1 else 0, 0, qi, 0)),
            ],
            out_specs=(
                pl.BlockSpec((1, tq, d_model), lambda b, qi: (b, qi, 0)),
                pl.BlockSpec((1, num_heads, tq, Sk), lambda b, qi: (b, 0, qi, 0)),
            ),
        ),
        compiler_params=pltpu.CompilerParams(
            dimension_semantics=("parallel", "parallel"),
            vmem_limit_bytes=48 * 1024 * 1024,
        ),
    )(q_p, k_p, v_p, mask)
    return out, attn_w


# ----------------------------------------------------------------------------
# MultiHeadAttention module (parameters + forward glue)
# ----------------------------------------------------------------------------
class MultiHeadAttention:
    def __init__(self, d_model, num_heads, key, use_bf16_matmul=False):
        assert d_model % num_heads == 0
        self.d_model = d_model
        self.num_heads = num_heads
        self.depth = d_model // num_heads
        # bf16 MXU operands help on v6e/v7x but break f32 bit-parity; off by default.
        self.cast_dtype = jnp.bfloat16 if use_bf16_matmul else None

        bound = 1.0 / (d_model ** 0.5)
        keys = jax.random.split(key, 8)

        def u(k, shape):
            return jax.random.uniform(
                k, shape, dtype=jnp.float32, minval=-bound, maxval=bound)

        # PyTorch layout (D_out, D_in) kept for the pure-JAX reference check.
        self.wq_w = u(keys[0], (d_model, d_model))
        self.wq_b = u(keys[1], (d_model,))
        self.wk_w = u(keys[2], (d_model, d_model))
        self.wk_b = u(keys[3], (d_model,))
        self.wv_w = u(keys[4], (d_model, d_model))
        self.wv_b = u(keys[5], (d_model,))
        self.dense_w = u(keys[6], (d_model, d_model))
        self.dense_b = u(keys[7], (d_model,))

        # Pre-transposed copies for the kernels (no in-kernel w.T, done once).
        self.wq_wt = self.wq_w.T
        self.wk_wt = self.wk_w.T
        self.wv_wt = self.wv_w.T
        self.dense_wt = self.dense_w.T
        # Fused QKV weights for the self-attention fast path (one pass over x).
        self.wqkv_wt = jnp.concatenate([self.wq_wt, self.wk_wt, self.wv_wt], axis=1)
        self.wqkv_b = jnp.concatenate([self.wq_b, self.wk_b, self.wv_b])

    def __call__(self, v, k, q, mask):
        B = q.shape[0]
        Sq, Sk, Sv = q.shape[1], k.shape[1], v.shape[1]
        D = self.d_model
        cd = self.cast_dtype

        if (q is k) and (k is v):
            # Self-attention: fused QKV projection -> single read of the activation.
            qkv = pallas_linear(q.reshape(-1, D), self.wqkv_wt, self.wqkv_b,
                                cast_dtype=cd).reshape(B, Sq, 3 * D)
            q_p = qkv[..., :D]
            k_p = qkv[..., D:2 * D]
            v_p = qkv[..., 2 * D:]
        else:
            q_p = pallas_linear(q.reshape(-1, D), self.wq_wt, self.wq_b,
                                cast_dtype=cd).reshape(B, Sq, D)
            k_p = pallas_linear(k.reshape(-1, D), self.wk_wt, self.wk_b,
                                cast_dtype=cd).reshape(B, Sk, D)
            v_p = pallas_linear(v.reshape(-1, D), self.wv_wt, self.wv_b,
                                cast_dtype=cd).reshape(B, Sv, D)

        # Head split / merge are folded into the attention kernel; the output is
        # already in concat (B, Sq, d_model) layout -> no transposes here.
        concat_attention, attention_weights = pallas_mha_attention(
            q_p, k_p, v_p, mask, self.num_heads, cast_dtype=cd)

        output = pallas_linear(
            concat_attention.reshape(-1, D), self.dense_wt, self.dense_b,
            cast_dtype=cd).reshape(B, Sq, D)
        return output, attention_weights


# ----------------------------------------------------------------------------
# Pure-JAX reference (mirrors the PyTorch forward) for correctness checking.
# ----------------------------------------------------------------------------
def reference_forward(mha, v, k, q, mask):
    def lin(x, w, b):
        return x @ w.T + b

    def split(x, B):
        x = x.reshape(B, -1, mha.num_heads, mha.depth)
        return jnp.transpose(x, (0, 2, 1, 3))

    B = q.shape[0]
    qp = split(lin(q, mha.wq_w, mha.wq_b), B)
    kp = split(lin(k, mha.wk_w, mha.wk_b), B)
    vp = split(lin(v, mha.wv_w, mha.wv_b), B)
    logits = jnp.einsum("bhqd,bhkd->bhqk", qp, kp) / (kp.shape[-1] ** 0.5)
    if mask is not None:
        logits = logits + mask * (-1.0e9)
    attn = jax.nn.softmax(logits, axis=-1)
    out = jnp.einsum("bhqk,bhkd->bhqd", attn, vp)
    out = jnp.transpose(out, (0, 2, 1, 3)).reshape(B, -1, mha.d_model)
    out = lin(out, mha.dense_w, mha.dense_b)
    return out, attn


if __name__ == "__main__":
    B, S, D_MODEL, NUM_HEADS = 2, 8, 32, 4

    root = jax.random.PRNGKey(0)
    k_params, k_q, k_k, k_v = jax.random.split(root, 4)

    mha = MultiHeadAttention(D_MODEL, NUM_HEADS, k_params)

    q = jax.random.normal(k_q, (B, S, D_MODEL), dtype=jnp.float32)
    k = jax.random.normal(k_k, (B, S, D_MODEL), dtype=jnp.float32)
    v = jax.random.normal(k_v, (B, S, D_MODEL), dtype=jnp.float32)

    # causal (look-ahead) mask, broadcastable to (B, H, Sq, Sk)
    mask = jnp.triu(jnp.ones((S, S), dtype=jnp.float32), k=1)[None, None, :, :]

    # cross-attention style inputs (distinct q/k/v) -> separate projection path
    out, attn_w = mha(v, k, q, mask)
    out = jax.block_until_ready(out)
    attn_w = jax.block_until_ready(attn_w)

    ref_out, ref_attn = reference_forward(mha, v, k, q, mask)
    assert out.shape == (B, S, D_MODEL)
    assert attn_w.shape == (B, NUM_HEADS, S, S)
    assert jnp.allclose(out, ref_out, atol=1e-4, rtol=1e-4), "output mismatch"
    assert jnp.allclose(attn_w, ref_attn, atol=1e-5, rtol=1e-4), "attn mismatch"

    # self-attention -> exercises the fused QKV projection fast path
    out2, attn_w2 = mha(q, q, q, mask)
    out2 = jax.block_until_ready(out2)
    attn_w2 = jax.block_until_ready(attn_w2)
    ref_out2, ref_attn2 = reference_forward(mha, q, q, q, mask)
    assert jnp.allclose(out2, ref_out2, atol=1e-4, rtol=1e-4), "self output mismatch"
    assert jnp.allclose(attn_w2, ref_attn2, atol=1e-5, rtol=1e-4), "self attn mismatch"

    print("KERNEL_OK")
</pallas_src>

<mosaic_0001>
module attributes {stable_mosaic.version = 11 : i64} {
  func.func @_linear_kernel(%arg0: i32, %arg1: i32, %arg2: i32, %arg3: memref<16x32xf32, #tpu.memory_space<vmem>>, %arg4: memref<32x32xf32, #tpu.memory_space<vmem>>, %arg5: memref<1x32xf32, #tpu.memory_space<vmem>>, %arg6: memref<16x32xf32, #tpu.memory_space<vmem>>, %arg7: memref<16x32xf32, #tpu.memory_space<vmem>>) attributes {dimension_semantics = [#tpu.dimension_semantics<parallel>, #tpu.dimension_semantics<parallel>, #tpu.dimension_semantics<arbitrary>], iteration_bounds = array<i64: 1, 1, 1>, scalar_prefetch = 0 : i64, scratch_operands = 1 : i64, tpu.core_type = #tpu.core_type<tc>, window_params = [{transform_indices = @transform_0, window_bounds = array<i64: 16, 32>}, {transform_indices = @transform_1, window_bounds = array<i64: 32, 32>}, {transform_indices = @transform_2, window_bounds = array<i64: 1, 32>}, {transform_indices = @transform_3, window_bounds = array<i64: 16, 32>}]} {
    %c0_i32 = arith.constant 0 : i32
    %0 = arith.cmpi eq, %arg2, %c0_i32 : i32
    %1 = arith.extui %0 : i1 to i32
    %c0_i32_0 = arith.constant 0 : i32
    %2 = arith.cmpi ne, %1, %c0_i32_0 : i32
    scf.if %2 {
      %cst_10 = arith.constant 0.000000e+00 : f32
      %12 = vector.broadcast %cst_10 : f32 to vector<16x32xf32>
      %c0_11 = arith.constant 0 : index
      %c0_12 = arith.constant 0 : index
      %13 = vector.load %arg7[%c0_11, %c0_12] : memref<16x32xf32, #tpu.memory_space<vmem>>, vector<16x32xf32>
      tpu.vector_store %arg7[%c0_11, %c0_12], %12 {strides = array<i32>} : memref<16x32xf32, #tpu.memory_space<vmem>>, vector<16x32xf32>,
    } else {
    }
    %c0 = arith.constant 0 : index
    %c0_1 = arith.constant 0 : index
    %3 = vector.load %arg3[%c0, %c0_1] : memref<16x32xf32, #tpu.memory_space<vmem>>, vector<16x32xf32>
    %c0_2 = arith.constant 0 : index
    %c0_3 = arith.constant 0 : index
    %4 = vector.load %arg4[%c0_2, %c0_3] : memref<32x32xf32, #tpu.memory_space<vmem>>, vector<32x32xf32>
    %c0_4 = arith.constant 0 : index
    %c0_5 = arith.constant 0 : index
    %5 = vector.load %arg7[%c0_4, %c0_5] : memref<16x32xf32, #tpu.memory_space<vmem>>, vector<16x32xf32>
    %cst = arith.constant dense<0.000000e+00> : vector<16x32xf32>
    %6 = tpu.matmul %3, %4, %cst {dimension_numbers = #tpu.dot_dimension_numbers<[1], [0], [0], [1], [0, 0, 1, 1], [], []>, precision = #tpu.contract_precision<fp32>} : vector<16x32xf32>, vector<32x32xf32>, vector<16x32xf32> -> vector<16x32xf32>
    %7 = arith.addf %5, %6 : vector<16x32xf32>
    %c0_6 = arith.constant 0 : index
    %c0_7 = arith.constant 0 : index
    %8 = vector.load %arg7[%c0_6, %c0_7] : memref<16x32xf32, #tpu.memory_space<vmem>>, vector<16x32xf32>
    tpu.vector_store %arg7[%c0_6, %c0_7], %7 {strides = array<i32>} : memref<16x32xf32, #tpu.memory_space<vmem>>, vector<16x32xf32>,
    %c0_i32_8 = arith.constant 0 : i32
    %9 = arith.cmpi eq, %arg2, %c0_i32_8 : i32
    %10 = arith.extui %9 : i1 to i32
    %c0_i32_9 = arith.constant 0 : i32
    %11 = arith.cmpi ne, %10, %c0_i32_9 : i32
    scf.if %11 {
      %c0_10 = arith.constant 0 : index
      %c0_11 = arith.constant 0 : index
      %12 = vector.load %arg7[%c0_10, %c0_11] : memref<16x32xf32, #tpu.memory_space<vmem>>, vector<16x32xf32>
      %c0_12 = arith.constant 0 : index
      %c0_13 = arith.constant 0 : index
      %13 = vector.load %arg5[%c0_12, %c0_13] : memref<1x32xf32, #tpu.memory_space<vmem>>, vector<1x32xf32>
      %14 = vector.broadcast %13 : vector<1x32xf32> to vector<16x32xf32>
      %15 = arith.addf %12, %14 : vector<16x32xf32>
      %c0_14 = arith.constant 0 : index
      %c0_15 = arith.constant 0 : index
      %16 = vector.load %arg6[%c0_14, %c0_15] : memref<16x32xf32, #tpu.memory_space<vmem>>, vector<16x32xf32>
      tpu.vector_store %arg6[%c0_14, %c0_15], %15 {strides = array<i32>} : memref<16x32xf32, #tpu.memory_space<vmem>>, vector<16x32xf32>,
    } else {
    }
    return
  }
  func.func @transform_0(%arg0: i32, %arg1: i32, %arg2: i32) -> (i32, i32) {
    %c0_i32 = arith.constant 0 : i32
    return %arg0, %arg2 : i32, i32
  }
  func.func @transform_1(%arg0: i32, %arg1: i32, %arg2: i32) -> (i32, i32) {
    %c0_i32 = arith.constant 0 : i32
    return %arg2, %arg1 : i32, i32
  }
  func.func @transform_2(%arg0: i32, %arg1: i32, %arg2: i32) -> (i32, i32) {
    %c0_i32 = arith.constant 0 : i32
    %c0_i32_0 = arith.constant 0 : i32
    return %c0_i32, %arg1 : i32, i32
  }
  func.func @transform_3(%arg0: i32, %arg1: i32, %arg2: i32) -> (i32, i32) {
    %c0_i32 = arith.constant 0 : i32
    return %arg0, %arg1 : i32, i32
  }
}

</mosaic_0001>

<bundles_post_ra>
// kernel: tpu_custom_call.1
= control target key start
LH: loop header
LB: loop body
LE: loop exit
PB: predicated region body
PF: predicated region fallthrough
CT: control target
= control target key end

     0   :  { %8 = vsyncpa [#allocation4], 0  ;;  %s497_s0 = inlined_call_operand.hbm [shape: f32[16,32], index: 0, kind: input, shape index: {}]   ;;  %s498_s1 = inlined_call_operand.hbm [shape: f32[32,32], index: 1, kind: input, shape index: {}]   ;;  %s499_s2 = inlined_call_operand.vmem [shape: f32[1,32], index: 2, kind: input, shape index: {}]   ;;  %s500_s3 = inlined_call_operand.hbm [shape: f32[16,32], index: 3, kind: output, shape index: {}]  }
   0x1   :  { %9 = vsyncpa [#allocation7], 0 }
   0x2   :  { %10 = vsyncpa [#allocation5], 0  ;;  %s15_s14 = sshll.u32 %s497_s0, 4  ;;  %s415_s15 = smov [#allocation3]   ;;  %s16_s14 = int_to_ptr.hbm [resolvable:$true] %s15_s14 }
   0x3   :  { %s17_s16 = sshll.u32 %s415_s15, 4  ;;  %s28_s19 = sshll.u32 %s498_s1, 4  ;;  %s18_s16 = int_to_ptr.vmem [resolvable:$true] %s17_s16  ;;  %s29_s19 = int_to_ptr.hbm [resolvable:$true] %s28_s19 }
   0x4   :  { %s416_s20 = smov 128   ;;  %s417_s21 = smov 8  }
   0x5   :  { %23 = dma.hbm_to_vmem [thread:$0]  %s16_s14, 256, %s18_s16, [#allocation4], %s416_s20, %s416_s20, %s417_s21  }
   0x6   :  { %s418_s22 = smov [#allocation6]  }
   0x7   :  { %s30_s23 = sshll.u32 %s418_s22, 4  ;;  %s31_s23 = int_to_ptr.vmem [resolvable:$true] %s30_s23 }
   0x8   :  { %36 = dma.hbm_to_vmem [thread:$0]  %s29_s19, 512, %s31_s23, [#allocation7], %s416_s20, %s416_s20, %s417_s21  }
   0x9   :  { %409 = dma.done.wait [#allocation4], 256  }
   0xa   :  { %410 = vsyncadd [#allocation4], 4294967040 }
   0xb   :  { %411 = dma.done.wait [#allocation7], 512  }
   0xc   :  { %412 = vsyncadd [#allocation7], 4294966784  ;;  %vm51_vm0 = vcmask 261120   ;;  %v59_v0 = vld [vmem:[#allocation6 + $0x18] sm:$0xff]  ;;  %v58_v1 = vld [vmem:[#allocation6 + $0x10] sm:$0xff]  ;;  %v419_v38 = vmov 0.0  }
   0xd   :  { %v57_v2 = vld [vmem:[#allocation6 + $0x8] sm:$0xff]  ;;  %v81_v3 = vand.u32 4294901760, %v59_v0  ;;  %v453_v4 = vand.u32 4294901760, %v58_v1  ;;  %v56_v6 = vld [vmem:[#allocation6] sm:$0xff]  ;;  %v55_v7 = vld [vmem:[#allocation3 + $0x8] sm:$0xff]  ;;  %52 = vst.msk [vmem:[#allocation2] sm:$0xff] %vm51_vm0, %v419_v38 }
   0xe   :  { %v455_v5 = vand.u32 4294901760, %v57_v2  ;;  %v54_v8 = vld [vmem:[#allocation3] sm:$0xff]  ;;  %v457_v9 = vand.u32 4294901760, %v56_v6  ;;  %v67_v10 = vsel %vm51_vm0, %v55_v7, 0  ;;  %53 = vst.msk [vmem:[#allocation2 + $0x8] sm:$0xff] %vm51_vm0, %v419_v38  ;;  %s420_s24 = smov [#allocation8]  }
   0xf   :  { %v64_v11 = vsel %vm51_vm0, %v54_v8, 0  ;;  %322 = vmatpush.msra.mxu2 %v81_v3  ;;  %v119_v12 = vsub.f32 %v59_v0, %v81_v3  ;;  %v461_v13 = vand.u32 4294901760, %v67_v10  ;;  %v125_v14 = vsub.f32 %v58_v1, %v453_v4  ;;  %82 = vmatpush.msra.mxu0 %v81_v3  ;;  %v336_v0 = vld [vmem:[%s499_s2] ss:$0 sm:$0xff]  ;;  %s306_s25 = sshll.u32 %s420_s24, 4  ;;  %s308_s28 = sshll.u32 %s500_s3, 4  ;;  %s307_s25 = int_to_ptr.vmem [resolvable:$true] %s306_s25  ;;  %s309_s28 = int_to_ptr.hbm [resolvable:$true] %s308_s28 }
  0x10   :  { %v131_v15 = vsub.f32 %v57_v2, %v455_v5  ;;  %v137_v16 = vsub.f32 %v56_v6, %v457_v9  ;;  %v89_v17 = vand.u32 4294901760, %v64_v11 }
  0x11   :  { %323 = vmatpush.msra.mxu2 %v453_v4  ;;  %v120_v18 = vand.u32 4294901760, %v119_v12  ;;  %v98_v19 = vsub.f32 %v67_v10, %v461_v13  ;;  %v126_v20 = vand.u32 4294901760, %v125_v14  ;;  %84 = vmatpush.msra.mxu0 %v453_v4 }
  0x12   :  { %v132_v21 = vand.u32 4294901760, %v131_v15  ;;  %v138_v22 = vand.u32 4294901760, %v137_v16  ;;  %v90_v23 = vsub.f32 %v64_v11, %v89_v17 }
  0x13   :  { %324 = vmatpush.msra.mxu2 %v455_v5  ;;  %v121_v24 = vsub.f32 %v119_v12, %v120_v18  ;;  %v99_v25 = vand.u32 4294901760, %v98_v19  ;;  %v127_v26 = vsub.f32 %v125_v14, %v126_v20  ;;  %86 = vmatpush.msra.mxu0 %v455_v5 }
  0x14   :  { %v133_v27 = vsub.f32 %v131_v15, %v132_v21  ;;  %v91_v28 = vand.u32 4294901760, %v90_v23  ;;  %v139_v32 = vsub.f32 %v137_v16, %v138_v22  ;;  %v60_v52 = vld [vmem:[#allocation2] sm:$0xff] }
  0x15   :  { %325 = vmatpush.msra.mxu2 %v457_v9  ;;  %v122_v29 = vand.u32 4294901760, %v121_v24  ;;  %v100_v30 = vsub.f32 %v98_v19, %v99_v25  ;;  %v128_v31 = vand.u32 4294901760, %v127_v26  ;;  %88 = vmatpush.msra.mxu0 %v457_v9  ;;  %v61_v62 = vld [vmem:[#allocation2 + $0x8] sm:$0xff] }
  0x16   :  { %v92_v33 = vsub.f32 %v90_v23, %v91_v28  ;;  %v134_v35 = vand.u32 4294901760, %v133_v27  ;;  %v140_v37 = vand.u32 4294901760, %v139_v32 }
  0x17   :  { %165 = vmatpush.msrb.mxu2 %v119_v12  ;;  %234 = vmatpush.msrb.mxu0 %v120_v18  ;;  %v101_v34 = vand.u32 4294901760, %v100_v30 }
  0x18   :  { %326 = vmatpush.msra.mxu3 %v122_v29  ;;  %123 = vmatpush.msra.mxu1 %v122_v29  ;;  %v93_v36 = vand.u32 4294901760, %v92_v33 }
  0x19   :  { %168 = vmatpush.msrb.mxu2 %v125_v14  ;;  %238 = vmatpush.msrb.mxu0 %v126_v20 }
  0x1a   :  { %102 = vmatmul.f32.vlgmr.msra.gmra.mxu2 %v101_v34  ;;  %327 = vmatpush.msra.mxu3 %v128_v31 }
  0x1b   :  { %171 = vmatpush.msrb.mxu2 %v131_v15  ;;  %129 = vmatpush.msra.mxu1 %v128_v31 }
  0x1c   :  { %328 = vmatpush.msra.mxu3 %v134_v35  ;;  %94 = vmatmul.f32.vlgmr.msra.gmra.mxu0 %v93_v36 }
  0x1d   :  { %174 = vmatpush.msrb.mxu2 %v137_v16  ;;  %135 = vmatpush.msra.mxu1 %v134_v35 }
  0x1e   :  { %329 = vmatpush.msra.mxu3 %v140_v37  ;;  %242 = vmatpush.msrb.mxu0 %v132_v21 }
  0x1f   :  { %147 = vmatmul.f32.vlgmr.msra.gmra.mxu3 %v461_v13  ;;  %141 = vmatpush.msra.mxu1 %v140_v37 }
  0x20   :  { %199 = vmatpush.msrb.mxu3 %v81_v3  ;;  %143 = vmatmul.f32.vlgmr.msra.gmra.mxu1 %v89_v17 }
  0x21   :  { %269 = vmatpush.msrb.mxu1 %v81_v3  ;;  %246 = vmatpush.msrb.mxu0 %v138_v22 }
  0x22   :  { %177 = vmatmul.f32.vlgmr.msrb.gmra.mxu2 %v90_v23  ;;  %201 = vmatpush.msrb.mxu3 %v453_v4 }
  0x23   :  { %271 = vmatpush.msrb.mxu1 %v453_v4 }
  0x24   :  { %203 = vmatpush.msrb.mxu3 %v455_v5  ;;  %248 = vmatmul.f32.vlgmr.msrb.gmra.mxu0 %v89_v17 }
  0x25   :  { %273 = vmatpush.msrb.mxu1 %v455_v5 }
  0x26   :  { %205 = vmatpush.msrb.mxu3 %v457_v9 }
  0x27   :  { %209 = vmatmul.f32.vlgmr.msrb.gmra.mxu3 %v91_v28  ;;  %275 = vmatpush.msrb.mxu1 %v457_v9 }
  0x28   :  { %277 = vmatmul.f32.vlgmr.msrb.gmra.mxu1 %v89_v17 }
  0x2a   :  { %182 = vmatmul.f32.gmra.mxu2 %v98_v19 }
  0x2c   :  { %252 = vmatmul.f32.gmra.mxu0 %v461_v13 }
  0x2f   :  { %215 = vmatmul.f32.gmra.mxu3 %v99_v25 }
  0x30   :  { %281 = vmatmul.f32.gmra.mxu1 %v461_v13 }
  0x99   :  { %v95_v40 = vpop.f32.mrf.mxu0 }
  0x9d   :  { %v103_v39 = vpop.f32.mrf.mxu2  ;;  %v144_v42 = vpop.f32.mrf.mxu1 }
  0x9e   :  { %v145_v43 = vadd.f32 %v144_v42, %v95_v40 }
  0xa1   :  { %v249_v45 = vpop.f32.mrf.mxu0 }
  0xa2   :  { %v148_v41 = vpop.f32.mrf.mxu3 }
  0xa3   :  { %v149_v53 = vadd.f32 %v148_v41, %v103_v39 }
  0xa5   :  { %v178_v44 = vpop.f32.mrf.mxu2  ;;  %v278_v48 = vpop.f32.mrf.mxu1 }
  0xa6   :  { %v179_v46 = vadd.f32 %v178_v44, %v145_v43 }
  0xa9   :  { %v253_v58 = vpop.f32.mrf.mxu0 }
  0xaa   :  { %v210_v47 = vpop.f32.mrf.mxu3 }
  0xab   :  { %v211_v49 = vadd.f32 %v210_v47, %v179_v46 }
  0xad   :  { %v250_v50 = vadd.f32 %v249_v45, %v211_v49  ;;  %v183_v51 = vpop.f32.mrf.mxu2  ;;  %v282_v60 = vpop.f32.mrf.mxu1 }
  0xae   :  { %v184_v55 = vadd.f32 %v183_v51, %v149_v53 }
  0xaf   :  { %v279_v54 = vadd.f32 %v278_v48, %v250_v50 }
  0xb1   :  { %v285_v56 = vadd.f32 %v279_v54, %v60_v52 }
  0xb2   :  { %v216_v57 = vpop.f32.mrf.mxu3 }
  0xb3   :  { %287 = vst.msk [vmem:[#allocation2] sm:$0xff] %vm51_vm0, %v285_v56  ;;  %v217_v59 = vadd.f32 %v216_v57, %v184_v55 }
  0xb5   :  { %v254_v61 = vadd.f32 %v253_v58, %v217_v59 }
  0xb7   :  { %v283_v63 = vadd.f32 %v282_v60, %v254_v61 }
  0xb9   :  { %v286_v1 = vadd.f32 %v283_v63, %v61_v62 }
  0xba   :  { %v292_v2 = vld [vmem:[#allocation2] sm:$0xff] }
  0xbb   :  { %288 = vst.msk [vmem:[#allocation2 + $0x8] sm:$0xff] %vm51_vm0, %v286_v1  ;;  %v298_v3 = vadd.f32 %v336_v0, %v292_v2 }
  0xbd   :  { %300 = vst.msk [vmem:[#allocation8] sm:$0xff] %vm51_vm0, %v298_v3 }
  0xc2   :  { %v293_v4 = vld [vmem:[#allocation2 + $0x8] sm:$0xff] }
  0xc3   :  { %v299_v5 = vadd.f32 %v336_v0, %v293_v4 }
  0xc5   :  { %301 = vst.msk [vmem:[#allocation8 + $0x8] sm:$0xff] %vm51_vm0, %v299_v5 }
  0xc6   :  { %314 = dma.vmem_to_hbm [thread:$0]  %s307_s25, 256, %s309_s28, [#allocation5], %s416_s20, %s416_s20, %s417_s21  }
  0xc7   :  { %413 = dma.done.wait [#allocation5], 256  }
  0xc8   :  { %414 = vsyncadd [#allocation5], 4294967040 }
  0xc9   :  { %319 = vsyncpa [#allocation4], 1 }
  0xca   :  { %320 = vsyncpa [#allocation7], 1 }
  0xcb   :  { %321 = vsyncpa [#allocation5], 1 }

</bundles_post_ra>
